<compile_context>
chip_gen: v7x
topology: tpu7x:2x2x1
jax: 0.10.0
libtpu: 0.0.40
codegen_flags: <defaults>
</compile_context>

<pallas_src>
import math

import jax
import jax.numpy as jnp
from jax import lax
from jax.experimental import pallas as pl
from jax.experimental.pallas import tpu as pltpu


_MIB = 1024 * 1024


# ------------------------------ sizing helpers ------------------------------

def _vmem_limit_bytes():
    """Chip-aware VMEM limit: ~100 MiB on v5e/v6e (128 MiB physical), ~48 MiB on
    v7x (64 MiB physical).  Falls back conservatively if the query fails."""
    try:
        cap = pltpu.get_tpu_info().vmem_capacity_bytes
    except Exception:
        cap = 64 * _MIB
    return int(min(100 * _MIB, max(32 * _MIB, cap - 16 * _MIB)))


def _divisor_cands(dim, opts):
    c = [o for o in opts if o <= dim and dim % o == 0]
    return c if c else [dim]


def _pick_linear_tiles(M, K, Nout, x_bytes, w_bytes, out_bytes, budget):
    """Prefer full-K tiles (weight resident along the contraction -> single pass
    over x) and large, 256-aligned tn/tm (fills the 256x256 MXU on v6e/v7x; still
    128-friendly on v5e).  Shrinks tm, then tn, then tk until the double-buffered
    working set fits the VMEM budget."""
    tk_opts = list(dict.fromkeys(([K] if K <= 8192 else [])
                                 + _divisor_cands(K, (2048, 1024, 512, 256, 128))))
    tn_opts = _divisor_cands(Nout, (1024, 512, 256, 128))
    tm_opts = _divisor_cands(M, (512, 256, 128, 64, 32, 16, 8))

    def fits(tm, tn, tk):
        use = (2 * tm * tk * x_bytes          # double-buffered x tile
               + 2 * tk * tn * w_bytes        # double-buffered W tile (bf16)
               + 2 * tm * tn * out_bytes      # double-buffered output tile
               + tm * tn * 4 + 2 * tn * 4)    # f32 accumulator + bias
        return use <= budget

    for tk in tk_opts:
        for tn in tn_opts:
            for tm in tm_opts:
                if fits(tm, tn, tk):
                    return tm, tn, tk
    return tm_opts[-1], tn_opts[-1], tk_opts[-1]


def _pick_attn_bt(B, N, C, budget):
    """Batch several sequences per attention grid step when one sequence presents
    fewer than 128 rows (amortizes ~0.35us/step overhead and fills vregs)."""
    per_b = 2 * (N * 3 * C * 2 + N * C * 2) + N * N * 4 + N * C * 4
    bt = 1
    for cand in range(1, B + 1):
        if B % cand == 0 and cand * per_b <= budget:
            bt = cand
            if cand * N >= 128:
                break
    return bt


# ----------------------------- Pallas kernels ------------------------------

def _linear_kernel(x_ref, wt_ref, b_ref, o_ref, acc_ref):
    # One (tm, tn) output tile of y = x @ W^T + b, accumulated over the K grid axis.
    # W is pre-transposed wrapper-side, so the MXU sees a plain (tm,tk)@(tk,tn)
    # (no per-step XLU transpose of the weight tile).
    k = pl.program_id(2)

    @pl.when(k == 0)
    def _():
        acc_ref[...] = jnp.zeros_like(acc_ref)

    # bf16 MXU operands, f32 VMEM accumulation.
    acc_ref[...] += jnp.dot(x_ref[...].astype(jnp.bfloat16), wt_ref[...],
                            preferred_element_type=jnp.float32)

    @pl.when(k == pl.num_programs(2) - 1)
    def _():
        # bias added once per output tile, on the last K step only
        o_ref[...] = (acc_ref[...] + b_ref[...]).astype(o_ref.dtype)


def pallas_linear(x2d, w, b, out_dtype):
    """x2d: (M, K); w: (Nout, K); b: (Nout,) -> (M, Nout) in out_dtype."""
    M, K = x2d.shape
    Nout = w.shape[0]
    wt = jnp.transpose(w).astype(jnp.bfloat16)        # one-time, fuses into weight prep
    b2d = b.astype(jnp.float32).reshape(1, Nout)
    limit = _vmem_limit_bytes()
    tm, tn, tk = _pick_linear_tiles(
        M, K, Nout,
        x_bytes=x2d.dtype.itemsize, w_bytes=2,
        out_bytes=jnp.dtype(out_dtype).itemsize,
        budget=int(limit * 0.8))
    grid = (M // tm, Nout // tn, K // tk)
    return pl.pallas_call(
        _linear_kernel,
        out_shape=jax.ShapeDtypeStruct((M, Nout), out_dtype),
        grid=grid,
        in_specs=[
            pl.BlockSpec((tm, tk), lambda i, j, k: (i, k)),
            pl.BlockSpec((tk, tn), lambda i, j, k: (k, j)),
            pl.BlockSpec((1, tn), lambda i, j, k: (0, j)),
        ],
        out_specs=pl.BlockSpec((tm, tn), lambda i, j, k: (i, j)),
        scratch_shapes=[pltpu.VMEM((tm, tn), jnp.float32)],
        compiler_params=pltpu.CompilerParams(
            dimension_semantics=("parallel", "parallel", "arbitrary"),
            vmem_limit_bytes=limit),
    )(x2d, wt, b2d)


def _make_attn_kernel(num_heads, bt, has_mask, mask_per_head):
    def kernel(*refs):
        if has_mask:
            qkv_ref, mask_ref, o_ref, oacc_ref = refs
        else:
            qkv_ref, o_ref, oacc_ref = refs
        C = o_ref.shape[-1]
        D = C // num_heads
        for b in range(bt):
            qkv = qkv_ref[b]                           # (N, 3C) bf16: one lane-dense load
            for h in range(num_heads):
                # qkv column layout is [3, H, D]: q_h | ... | k_h | ... | v_h
                # (softmax scale pre-folded into the q weight/bias wrapper-side).
                q = qkv[:, h * D:(h + 1) * D]
                k = qkv[:, C + h * D:C + (h + 1) * D]
                v = qkv[:, 2 * C + h * D:2 * C + (h + 1) * D]
                s = lax.dot_general(q, k, (((1,), (1,)), ((), ())),
                                    preferred_element_type=jnp.float32)
                if has_mask:
                    s = s + mask_ref[h if mask_per_head else 0].astype(jnp.float32)
                m = jnp.max(s, axis=-1, keepdims=True)
                p = jnp.exp(s - m)
                denom = jnp.sum(p, axis=-1, keepdims=True)
                pv = jnp.dot(p.astype(qkv.dtype), v,
                             preferred_element_type=jnp.float32)
                # normalize AFTER the PV matmul: N*D VPU muls instead of N*N;
                # per-head writeback into scratch bounds live ranges.
                oacc_ref[:, h * D:(h + 1) * D] = pv * pl.reciprocal(denom, approx=True)
            o_ref[b] = oacc_ref[...].astype(o_ref.dtype)   # one lane-dense (N, C) store
    return kernel


def pallas_attention(qkv, attn_mask, num_heads):
    """qkv: (B, N, 3C) bf16 from the fused projection -> (B, N, C) bf16.

    bt sequences per grid step (all H heads handled inside the kernel); q/k/v
    sliced straight out of the (N, 3C) buffer (no HBM transposes); mask held
    resident once in bf16; output lane-dense.
    """
    B, N, C3 = qkv.shape
    C = C3 // 3
    limit = _vmem_limit_bytes()
    bt = _pick_attn_bt(B, N, C, int(limit * 0.6))
    has_mask = attn_mask is not None
    operands = [qkv]
    in_specs = [pl.BlockSpec((bt, N, C3), lambda b: (b, 0, 0))]
    mask_per_head = False
    if has_mask:
        mask = jnp.asarray(attn_mask)
        if mask.ndim == 2:
            mask = mask[None]                          # shared across heads
        Hm = mask.shape[0]
        if Hm == num_heads:
            mask_per_head = num_heads > 1
        elif Hm == 1:
            mask_per_head = False
        else:
            raise ValueError(
                f"attn_mask leading dim must be 1 or num_heads, got {Hm}")
        mask = mask.astype(jnp.bfloat16)               # half the resident bytes of f32
        operands.append(mask)
        in_specs.append(pl.BlockSpec((Hm, N, N), lambda b: (0, 0, 0)))
    kernel = _make_attn_kernel(num_heads, bt, has_mask, mask_per_head)
    # TODO(synk): for long sequences switch to an online-softmax (flash) variant with
    # head / q-tile / kv grid axes and per-head mask tiling instead of a full (N, N)
    # score tile and resident (Hm, N, N) mask (mandatory on v7x's 64 MiB VMEM).
    return pl.pallas_call(
        kernel,
        out_shape=jax.ShapeDtypeStruct((B, N, C), jnp.bfloat16),
        grid=(B // bt,),
        in_specs=in_specs,
        out_specs=pl.BlockSpec((bt, N, C), lambda b: (b, 0, 0)),
        scratch_shapes=[pltpu.VMEM((N, C), jnp.float32)],
        compiler_params=pltpu.CompilerParams(
            dimension_semantics=("parallel",),
            vmem_limit_bytes=limit),
    )(*operands)


# ------------------------------ Module wrapper ------------------------------

def init_params(key, dim, num_heads, lora_rank, num_tasks):
    """Deterministic synthetic parameters matching the module's shapes."""
    keys = jax.random.split(key, 6 + 4 * num_tasks)
    bound = 1.0 / math.sqrt(dim)
    params = {
        "dim": dim,
        "num_heads": num_heads,
        "qkv_weight": jax.random.uniform(keys[0], (3 * dim, dim),
                                         minval=-bound, maxval=bound),
        "qkv_bias": jax.random.uniform(keys[1], (3 * dim,),
                                       minval=-bound, maxval=bound),
        "proj_weight": jax.random.uniform(keys[2], (dim, dim),
                                          minval=-bound, maxval=bound),
        "proj_bias": jax.random.uniform(keys[3], (dim,),
                                        minval=-bound, maxval=bound),
        "lora": [],
    }
    # LoRA adapters (A: (rank, dim), B: (dim, rank)).  The module zero-inits B;
    # small random values here so the merged-weight path is actually exercised.
    for t in range(num_tasks):
        ka, kb, kc, kd = keys[4 + 4 * t: 8 + 4 * t]
        A_k = jax.random.uniform(ka, (lora_rank, dim), minval=-bound, maxval=bound)
        B_k = 0.01 * jax.random.normal(kb, (dim, lora_rank))
        A_v = jax.random.uniform(kc, (lora_rank, dim), minval=-bound, maxval=bound)
        B_v = 0.01 * jax.random.normal(kd, (dim, lora_rank))
        params["lora"].append((A_k, B_k, A_v, B_v))
    return params


def merged_qkv_weight_and_bias(params, scale):
    """LoRA merge (k/v weights get sum_t B_t @ A_t added, matching the PyTorch loop)
    with the softmax scale folded into the q rows of the weight and bias (free,
    wrapper-side; removes an N*D VPU multiply per head per attention step)."""
    q_w, k_w, v_w = jnp.split(params["qkv_weight"], 3, axis=0)
    for (A_k, B_k, A_v, B_v) in params["lora"]:
        k_w = k_w + B_k @ A_k
        v_w = v_w + B_v @ A_v
    C = q_w.shape[1]
    w = jnp.concatenate([q_w * scale, k_w, v_w], axis=0)
    b = params["qkv_bias"]
    b = jnp.concatenate([b[:C] * scale, b[C:]])
    return w, b


def mha_masked_lora1_forward(params, x, x_proj, probs, attn_mask=None):
    # TODO(synk): the x.shape[0] > 128 SVD/pinverse weight-refresh branch and the
    # get_input_matrix bookkeeping are training-time side effects, not part of the
    # numerical forward here (B <= 128), so they are omitted.
    del x_proj  # unused by the PyTorch forward as well
    B, N, C = x.shape
    H = params["num_heads"]
    D = C // H
    scale = D ** (-0.5)

    w_merged, b_merged = merged_qkv_weight_and_bias(params, scale)       # glue (XLA)
    qkv = pallas_linear(x.reshape(B * N, C), w_merged, b_merged,
                        out_dtype=jnp.bfloat16)                          # (B*N, 3C) Pallas
    qkv = qkv.reshape(B, N, 3 * C)                                       # free reshape
    o = pallas_attention(qkv, attn_mask, H)                              # (B, N, C) Pallas, bf16
    out = pallas_linear(o.reshape(B * N, C), params["proj_weight"],
                        params["proj_bias"], out_dtype=x.dtype)          # Pallas
    out = out.reshape(B, N, C)
    return out, out, probs


# --------------------------------- Reference ---------------------------------

def reference_forward(params, x, x_proj, probs, attn_mask=None):
    del x_proj
    B, N, C = x.shape
    H = params["num_heads"]
    D = C // H
    scale = D ** (-0.5)
    q_w, k_w, v_w = jnp.split(params["qkv_weight"], 3, axis=0)
    for (A_k, B_k, A_v, B_v) in params["lora"]:
        k_w = k_w + B_k @ A_k
        v_w = v_w + B_v @ A_v
    w_merged = jnp.concatenate([q_w, k_w, v_w], axis=0)
    qkv = x.reshape(B * N, C) @ w_merged.T + params["qkv_bias"]
    qkv = qkv.reshape(B, N, 3, H, D).transpose(2, 0, 3, 1, 4)
    q, k, v = qkv[0], qkv[1], qkv[2]
    attn = jnp.einsum("bhnd,bhmd->bhnm", q, k) * scale
    if attn_mask is not None:
        mask = attn_mask if attn_mask.ndim == 3 else attn_mask[None]
        attn = attn + mask[None]
    attn = jax.nn.softmax(attn, axis=-1)
    o = jnp.einsum("bhnm,bhmd->bhnd", attn, v).transpose(0, 2, 1, 3).reshape(B, N, C)
    out = o.reshape(B * N, C) @ params["proj_weight"].T + params["proj_bias"]
    out = out.reshape(B, N, C)
    return out, out, probs


# ----------------------------------- Main -----------------------------------

if __name__ == "__main__":
    B, N, C = 2, 8, 32
    num_heads, lora_rank, num_tasks = 4, 10, 2

    key = jax.random.PRNGKey(0)
    k_param, k_x, k_probs, k_mask = jax.random.split(key, 4)

    params = init_params(k_param, C, num_heads, lora_rank, num_tasks)
    x = jax.random.normal(k_x, (B, N, C), dtype=jnp.float32)
    x_proj = x  # unused by the forward, present for signature parity
    probs = jax.random.uniform(k_probs, (B, num_tasks), dtype=jnp.float32)
    attn_mask = 0.1 * jax.random.normal(k_mask, (num_heads, N, N), dtype=jnp.float32)

    # tolerance covers bf16 MXU operands (f32 accumulation) + approx softmax reciprocal
    ATOL = RTOL = 5e-2

    out, out2, probs_out = mha_masked_lora1_forward(params, x, x_proj, probs, attn_mask)
    out = jax.block_until_ready(out)
    ref_out, _, _ = reference_forward(params, x, x_proj, probs, attn_mask)
    assert out.shape == (B, N, C)
    assert jnp.allclose(out.astype(jnp.float32), ref_out, atol=ATOL, rtol=RTOL), \
        "mismatch vs reference (per-head mask)"
    assert jnp.allclose(probs_out, probs)

    # shared (N, N) mask variant (exercises the Hm == 1 path)
    mask2d = attn_mask[0]
    out_s, _, _ = mha_masked_lora1_forward(params, x, x_proj, probs, mask2d)
    out_s = jax.block_until_ready(out_s)
    ref_s, _, _ = reference_forward(params, x, x_proj, probs, mask2d)
    assert jnp.allclose(out_s.astype(jnp.float32), ref_s, atol=ATOL, rtol=RTOL), \
        "mismatch (shared mask)"

    # mask-free variant (no mask DMA at all)
    out_nm, _, _ = mha_masked_lora1_forward(params, x, x_proj, probs, None)
    out_nm = jax.block_until_ready(out_nm)
    ref_nm, _, _ = reference_forward(params, x, x_proj, probs, None)
    assert jnp.allclose(out_nm.astype(jnp.float32), ref_nm, atol=ATOL, rtol=RTOL), \
        "mismatch (no mask)"

    print("KERNEL_OK")
</pallas_src>

<mosaic_0001>
module attributes {stable_mosaic.version = 11 : i64} {
  func.func @_linear_kernel(%arg0: i32, %arg1: i32, %arg2: i32, %arg3: memref<16x32xf32, #tpu.memory_space<vmem>>, %arg4: memref<32x96xbf16, #tpu.memory_space<vmem>>, %arg5: memref<1x96xf32, #tpu.memory_space<vmem>>, %arg6: memref<16x96xbf16, #tpu.memory_space<vmem>>, %arg7: memref<16x96xf32, #tpu.memory_space<vmem>>) attributes {dimension_semantics = [#tpu.dimension_semantics<parallel>, #tpu.dimension_semantics<parallel>, #tpu.dimension_semantics<arbitrary>], iteration_bounds = array<i64: 1, 1, 1>, scalar_prefetch = 0 : i64, scratch_operands = 1 : i64, tpu.core_type = #tpu.core_type<tc>, window_params = [{transform_indices = @transform_0, window_bounds = array<i64: 16, 32>}, {transform_indices = @transform_1, window_bounds = array<i64: 32, 96>}, {transform_indices = @transform_2, window_bounds = array<i64: 1, 96>}, {transform_indices = @transform_3, window_bounds = array<i64: 16, 96>}]} {
    %c0_i32 = arith.constant 0 : i32
    %0 = arith.cmpi eq, %arg2, %c0_i32 : i32
    %1 = arith.extui %0 : i1 to i32
    %c0_i32_0 = arith.constant 0 : i32
    %2 = arith.cmpi ne, %1, %c0_i32_0 : i32
    scf.if %2 {
      %cst_10 = arith.constant 0.000000e+00 : f32
      %13 = vector.broadcast %cst_10 : f32 to vector<16x96xf32>
      %c0_11 = arith.constant 0 : index
      %c0_12 = arith.constant 0 : index
      %14 = vector.load %arg7[%c0_11, %c0_12] : memref<16x96xf32, #tpu.memory_space<vmem>>, vector<16x96xf32>
      tpu.vector_store %arg7[%c0_11, %c0_12], %13 {strides = array<i32>} : memref<16x96xf32, #tpu.memory_space<vmem>>, vector<16x96xf32>,
    } else {
    }
    %c0 = arith.constant 0 : index
    %c0_1 = arith.constant 0 : index
    %3 = vector.load %arg7[%c0, %c0_1] : memref<16x96xf32, #tpu.memory_space<vmem>>, vector<16x96xf32>
    %c0_2 = arith.constant 0 : index
    %c0_3 = arith.constant 0 : index
    %4 = vector.load %arg3[%c0_2, %c0_3] : memref<16x32xf32, #tpu.memory_space<vmem>>, vector<16x32xf32>
    %5 = arith.truncf %4 : vector<16x32xf32> to vector<16x32xbf16>
    %c0_4 = arith.constant 0 : index
    %c0_5 = arith.constant 0 : index
    %6 = vector.load %arg4[%c0_4, %c0_5] : memref<32x96xbf16, #tpu.memory_space<vmem>>, vector<32x96xbf16>
    %cst = arith.constant dense<0.000000e+00> : vector<16x96xf32>
    %7 = tpu.matmul %5, %6, %cst {dimension_numbers = #tpu.dot_dimension_numbers<[1], [0], [0], [1], [0, 0, 1, 1], [], []>} : vector<16x32xbf16>, vector<32x96xbf16>, vector<16x96xf32> -> vector<16x96xf32>
    %8 = arith.addf %3, %7 : vector<16x96xf32>
    %c0_6 = arith.constant 0 : index
    %c0_7 = arith.constant 0 : index
    %9 = vector.load %arg7[%c0_6, %c0_7] : memref<16x96xf32, #tpu.memory_space<vmem>>, vector<16x96xf32>
    tpu.vector_store %arg7[%c0_6, %c0_7], %8 {strides = array<i32>} : memref<16x96xf32, #tpu.memory_space<vmem>>, vector<16x96xf32>,
    %c0_i32_8 = arith.constant 0 : i32
    %10 = arith.cmpi eq, %arg2, %c0_i32_8 : i32
    %11 = arith.extui %10 : i1 to i32
    %c0_i32_9 = arith.constant 0 : i32
    %12 = arith.cmpi ne, %11, %c0_i32_9 : i32
    scf.if %12 {
      %c0_10 = arith.constant 0 : index
      %c0_11 = arith.constant 0 : index
      %13 = vector.load %arg7[%c0_10, %c0_11] : memref<16x96xf32, #tpu.memory_space<vmem>>, vector<16x96xf32>
      %c0_12 = arith.constant 0 : index
      %c0_13 = arith.constant 0 : index
      %14 = vector.load %arg5[%c0_12, %c0_13] : memref<1x96xf32, #tpu.memory_space<vmem>>, vector<1x96xf32>
      %15 = vector.broadcast %14 : vector<1x96xf32> to vector<16x96xf32>
      %16 = arith.addf %13, %15 : vector<16x96xf32>
      %17 = arith.truncf %16 : vector<16x96xf32> to vector<16x96xbf16>
      %c0_14 = arith.constant 0 : index
      %c0_15 = arith.constant 0 : index
      %18 = vector.load %arg6[%c0_14, %c0_15] : memref<16x96xbf16, #tpu.memory_space<vmem>>, vector<16x96xbf16>
      tpu.vector_store %arg6[%c0_14, %c0_15], %17 {strides = array<i32>} : memref<16x96xbf16, #tpu.memory_space<vmem>>, vector<16x96xbf16>,
    } else {
    }
    return
  }
  func.func @transform_0(%arg0: i32, %arg1: i32, %arg2: i32) -> (i32, i32) {
    %c0_i32 = arith.constant 0 : i32
    return %arg0, %arg2 : i32, i32
  }
  func.func @transform_1(%arg0: i32, %arg1: i32, %arg2: i32) -> (i32, i32) {
    %c0_i32 = arith.constant 0 : i32
    return %arg2, %arg1 : i32, i32
  }
  func.func @transform_2(%arg0: i32, %arg1: i32, %arg2: i32) -> (i32, i32) {
    %c0_i32 = arith.constant 0 : i32
    %c0_i32_0 = arith.constant 0 : i32
    return %c0_i32, %arg1 : i32, i32
  }
  func.func @transform_3(%arg0: i32, %arg1: i32, %arg2: i32) -> (i32, i32) {
    %c0_i32 = arith.constant 0 : i32
    return %arg0, %arg1 : i32, i32
  }
}

</mosaic_0001>

<bundles_post_ra>
// kernel: tpu_custom_call.1
= control target key start
LH: loop header
LB: loop body
LE: loop exit
PB: predicated region body
PF: predicated region fallthrough
CT: control target
= control target key end

     0   :  { %8 = vsyncpa [#allocation4], 0  ;;  %s345_s0 = inlined_call_operand.hbm [shape: f32[16,32], index: 0, kind: input, shape index: {}]   ;;  %s346_s1 = inlined_call_operand.hbm [shape: bf16[32,96], index: 1, kind: input, shape index: {}]   ;;  %s347_s2 = inlined_call_operand.vmem [shape: f32[1,96], index: 2, kind: input, shape index: {}]   ;;  %s348_s3 = inlined_call_operand.hbm [shape: bf16[16,96], index: 3, kind: output, shape index: {}]  }
   0x1   :  { %9 = vsyncpa [#allocation7], 0 }
   0x2   :  { %10 = vsyncpa [#allocation5], 0  ;;  %s267_s12 = smov [#allocation3]   ;;  %s195_s16 = scalar_lea.hbm %s345_s0, 256 }
   0x3   :  { %s16_s13 = sshll.u32 %s267_s12, 4  ;;  %p196_p0 = scmp.ne.s32.totalorder %s345_s0, %s195_s16  ;;  %s17_s13 = int_to_ptr.vmem [resolvable:$true] %s16_s13 }
   0x4   :  { %p199_p1 = scmp.lt.u32.totalorder %s195_s16, %s345_s0 }
   0x6   :  { %p201_p2 = pnand %p199_p1, %p196_p0 }
   0x8   :  { %204 = shalt.err (!%p201_p2)
}
   0x9   :  { %s205_s21 = scalar_lea.vmem %s17_s13, 256  ;;  %p210_p4 = scmp.lt.s32.totalorder %s17_s13, %s17_s13 }
   0xa   :  { %p206_p3 = scmp.ne.s32.totalorder %s17_s13, %s205_s21  ;;  %p211_p5 = scmp.lt.s32.totalorder %s205_s21, %s205_s21 }
   0xc   :  { %p212_p6 = por %p211_p5, %p210_p4 }
   0xe   :  { %p213_p7 = pnand %p212_p6, %p206_p3 }
  0x10   :  { %216 = shalt.err (!%p213_p7)
}
  0x11   :  { %s268_s22 = smov 128   ;;  %s269_s23 = smov 8  }
  0x12   :  { %22 = dma.hbm_to_vmem [thread:$0]  %s345_s0, 256, %s17_s13, [#allocation4], %s268_s22, %s268_s22, %s269_s23  }
  0x13   :  { %s270_s26 = smov [#allocation6]   ;;  %s217_s30 = scalar_lea.hbm %s346_s1, 256 }
  0x14   :  { %s28_s27 = sshll.u32 %s270_s26, 4  ;;  %p218_p8 = scmp.ne.s32.totalorder %s346_s1, %s217_s30  ;;  %s29_s27 = int_to_ptr.vmem [resolvable:$true] %s28_s27 }
  0x15   :  { %p221_p9 = scmp.lt.u32.totalorder %s217_s30, %s346_s1 }
  0x17   :  { %p223_p10 = pnand %p221_p9, %p218_p8 }
  0x19   :  { %226 = shalt.err (!%p223_p10)
}
  0x1a   :  { %s227_s8 = scalar_lea.vmem %s29_s27, 256  ;;  %p232_p12 = scmp.lt.s32.totalorder %s29_s27, %s29_s27 }
  0x1b   :  { %p228_p11 = scmp.ne.s32.totalorder %s29_s27, %s227_s8  ;;  %p233_p13 = scmp.lt.s32.totalorder %s227_s8, %s227_s8 }
  0x1d   :  { %p234_p0 = por %p233_p13, %p232_p12 }
  0x1f   :  { %p235_p1 = pnand %p234_p0, %p228_p11 }
  0x21   :  { %238 = shalt.err (!%p235_p1)
}
  0x22   :  { %s271_s0 = smov 64   ;;  %s272_s9 = smov 4  }
  0x23   :  { %34 = dma.hbm_to_vmem [thread:$0]  %s346_s1, 256, %s29_s27, [#allocation7], %s271_s0, %s271_s0, %s272_s9  }
  0x24   :  { %261 = dma.done.wait [#allocation4], 256  }
  0x25   :  { %262 = vsyncadd [#allocation4], 4294967040 }
  0x26   :  { %263 = dma.done.wait [#allocation7], 256  }
  0x27   :  { %264 = vsyncadd [#allocation7], 4294967040  ;;  %vm48_vm0 = vcmask 785408   ;;  %v273_v0 = vmov 0.0   ;;  %vm274_vm1 = vmmov 0   ;;  %v193_v1 = vld [vmem:[#allocation6] sm:$0xff]  }
  0x28   :  { %49 = vst.msk [vmem:[#allocation2] sm:$0xff] %vm48_vm0, %v273_v0  ;;  %50 = vst.msk [vmem:[#allocation2 + $0x8] sm:$0xff] %vm48_vm0, %v273_v0  ;;  %176 = vmatprep.subr.bf16.mxu0 %v273_v0  ;;  %180 = vmatprep.mubr.msk.bf16.mxu0 %vm274_vm1, %v273_v0  ;;  %v194_v2 = vld [vmem:[#allocation6 + $0x8] sm:$0xff]   ;;  %v53_v3 = vld [vmem:[#allocation3] sm:$0xff]  ;;  %vm72_vm2 = vcmask 261120   ;;  %vm144_vm3 = vcmask 781312  }
  0x29   :  { %177 = vmatpush3.bf16.msra.mxu0 %v193_v1  ;;  %v54_v4 = vld [vmem:[#allocation3 + $0x8] sm:$0xff]  ;;  %v168_v14 = vld [vmem:[%s347_s2] ss:$0 sm:$0xff]  ;;  %s275_s13 = smov [#allocation8]  }
  0x2a   :  { %178 = vmatprep.subr.bf16.mxu0 %v273_v0  ;;  %v55_v5 = vpack.c.bf16 %v54_v4, %v53_v3  ;;  %s152_s14 = sshll.u32 %s275_s13, 4  ;;  %s153_s14 = int_to_ptr.vmem [resolvable:$true] %s152_s14 }
  0x2b   :  { %s239_s15 = scalar_lea.vmem %s153_s14, 128  ;;  %p244_p3 = scmp.lt.s32.totalorder %s153_s14, %s153_s14 }
  0x2c   :  { %p240_p2 = scmp.ne.s32.totalorder %s153_s14, %s239_s15  ;;  %p245_p4 = scmp.lt.s32.totalorder %s239_s15, %s239_s15 }
  0x2d   :  { %179 = vmatpush3.bf16.msra.mxu0 %v194_v2 }
  0x2e   :  { %p246_p5 = por %p245_p4, %p244_p3 }
  0x2f   :  { %v51_v6 = vld [vmem:[#allocation2] sm:$0xff]  ;;  %v52_v8 = vld [vmem:[#allocation2 + $0x8] sm:$0xff] }
  0x30   :  { %181 = vmatmul.mubr.msk.bf16.vlgmr.msra.gmra.mrb[0].mxu0 %vm72_vm2, %v55_v5  ;;  %p247_p6 = pnand %p246_p5, %p240_p2 }
 0x103   :  { %v110_v7 = vpop.f32.mrb[0].mxu0 }
 0x104   :  { %v117_v9 = vadd.f32 %v110_v7, %v51_v6  ;;  %v182_v10 = vpop.f32.mrb[1].mxu0 }
 0x105   :  { %v113_v11 = vpop.f32.mrb[2].mxu0 }
 0x106   :  { %120 = vst.msk [vmem:[#allocation2] sm:$0xff] %vm48_vm0, %v117_v9  ;;  %v118_v12 = vadd.f32 %v113_v11, %v52_v8  ;;  %v183_v13 = vpop.f32.mrb[3].mxu0 }
 0x108   :  { %121 = vst.msk [vmem:[#allocation2 + $0x8] sm:$0xff] %vm48_vm0, %v118_v12 }
 0x10d   :  { %v125_v15 = vld [vmem:[#allocation2] sm:$0xff] }
 0x10e   :  { %v134_v16 = vadd.f32 %v168_v14, %v125_v15 }
 0x10f   :  { %v126_v17 = vld [vmem:[#allocation2 + $0x8] sm:$0xff] }
 0x110   :  { %v135_v18 = vadd.f32 %v168_v14, %v126_v17  ;;  %v171_v19 = vpack.c.bf16 %v134_v16, %v134_v16 }
 0x112   :  { %v172_v20 = vpack.c.bf16 %v135_v18, %v135_v18  ;;  %145 = vst.msk [vmem:[#allocation8] sm:$0xf] %vm144_vm3, %v171_v19 }
 0x114   :  { %146 = vst.msk [vmem:[#allocation8 + $0x4] sm:$0xf] %vm144_vm3, %v172_v20 }
 0x115   :  { %250 = shalt.err (!%p247_p6)
}
 0x116   :  { %s251_s17 = scalar_lea.hbm %s348_s3, 128 }
 0x117   :  { %p252_p7 = scmp.ne.s32.totalorder %s348_s3, %s251_s17  ;;  %p255_p8 = scmp.lt.u32.totalorder %s251_s17, %s348_s3 }
 0x119   :  { %p257_p9 = pnand %p255_p8, %p252_p7 }
 0x11b   :  { %260 = shalt.err (!%p257_p9)
}
 0x11c   :  { %158 = dma.vmem_to_hbm [thread:$0]  %s153_s14, 128, %s348_s3, [#allocation5], %s271_s0, %s271_s0, %s272_s9  }
 0x11d   :  { %265 = dma.done.wait [#allocation5], 128  }
 0x11e   :  { %266 = vsyncadd [#allocation5], 4294967168 }
 0x11f   :  { %162 = vsyncpa [#allocation4], 1 }
 0x120   :  { %163 = vsyncpa [#allocation7], 1 }
 0x121   :  { %164 = vsyncpa [#allocation5], 1 }

</bundles_post_ra>
